<compile_context>
chip_gen: v6e
topology: v6e:2x2x1
jax: 0.10.0
libtpu: 0.0.40
codegen_flags: <defaults>
</compile_context>

<pallas_src>
import functools
import math

import jax
import jax.numpy as jnp
from jax.experimental import pallas as pl
from jax.experimental.pallas import tpu as pltpu

LANE = 128
SUB = 8


def _gelu_tanh(x):
    # TODO(synk): PyTorch's default nn.GELU is the exact erf form; the tanh
    # approximation is used here (EUP-friendly) for the synthetic backbone.
    c = math.sqrt(2.0 / math.pi)
    return 0.5 * x * (1.0 + jnp.tanh(c * (x + 0.044715 * x * x * x)))


# ---------------------------------------------------------------------------
# per-generation configuration helpers (all wrapped so they can never crash)
# ---------------------------------------------------------------------------
def _vmem_budget_bytes():
    cap = 64 * 1024 * 1024                      # conservative v7x default
    try:
        cap = int(pltpu.get_tpu_info().vmem_capacity_bytes)
    except Exception:
        pass
    # Leave headroom for Mosaic's own scratch: ~48 MiB on 64 MiB parts (v7x),
    # ~96-100 MiB on 128 MiB parts (v5e / v6e).
    return min(int(cap * 3 // 4), 100 * 1024 * 1024)


def _mxu_row_cap():
    # v5e (and older) MXUs are 128 rows wide; v6e/v7x are 256.
    try:
        kind = jax.devices()[0].device_kind.lower()
    except Exception:
        return 128
    return 128 if ("v4" in kind or "v5" in kind) else 256


def _num_tensorcores():
    try:
        return max(1, int(getattr(jax.devices()[0], "num_cores", 1) or 1))
    except Exception:
        return 1


def _pick_tm(B, cap, num_cores):
    """Batch tile: fill the MXU rows, avoid padding when possible, and keep
    >= 2 'parallel' batch tiles on 2-TensorCore chips when B allows it."""
    if B > cap:
        return cap
    if num_cores >= 2 and B >= 2 * SUB and B % (2 * SUB) == 0:
        return B // 2                            # two sublane-aligned tiles, no padding
    return B                                     # block dim == full array dim is always legal


# ---------------------------------------------------------------------------
# parameter preparation (done once, reused across calls)
# ---------------------------------------------------------------------------
def prepare_params(wb, bb, wh, bh):
    """Cast/pad the reused weights once (bf16 MXU operands, lane-dense head)."""
    K, D = wb.shape
    NC = wh.shape[1]
    Kp = pl.cdiv(K, LANE) * LANE
    NCp = pl.cdiv(NC, LANE) * LANE
    wb_p = jnp.zeros((Kp, D), jnp.bfloat16).at[:K, :].set(wb.astype(jnp.bfloat16))
    wh_p = jnp.zeros((D, NCp), jnp.bfloat16).at[:, :NC].set(wh.astype(jnp.bfloat16))
    bb_p = bb.reshape(1, D).astype(jnp.float32)
    bh_p = jnp.zeros((1, NCp), jnp.float32).at[0, :NC].set(bh.astype(jnp.float32))
    return dict(wb=wb_p, bb=bb_p, wh=wh_p, bh=bh_p,
                K=K, D=D, NC=NC, Kp=Kp, NCp=NCp)


# ---------------------------------------------------------------------------
# kernel
# ---------------------------------------------------------------------------
def multicrop_kernel(x_ref, wb_ref, bb_ref, wh_ref, bh_ref,
                     logits_ref, mlm_ref, crsc_ref, acc_ref,
                     *, tm, b_orig):
    """Fused backbone + head forward over a (batch_tile, K_tile) grid.

    x_ref:   [tm, tk]   f32 flattened-input tile (cast to bf16 in-kernel)
    wb_ref:  [tk, D]    bf16 backbone weight tile (streamed over K)
    bb_ref:  [1, D]     f32 backbone bias (resident)
    wh_ref:  [D, NCp]   bf16 head weight (resident)
    bh_ref:  [1, NCp]   f32 head bias (resident)
    logits_ref: [tm, NCp] f32 output tile
    mlm_ref / crsc_ref: [1, 1, D] f32 per-batch-tile per-lane partial sums
    acc_ref: [tm, D]    f32 accumulator scratch (persists across the K axis)
    """
    i = pl.program_id(0)          # batch-tile index  ("parallel")
    k = pl.program_id(1)          # K reduction index ("arbitrary", trailing)

    @pl.when(k == 0)
    def _():
        acc_ref[...] = jnp.zeros_like(acc_ref)

    # x is read from HBM in f32 (read once); the bf16 cast happens on the VPU
    # and hides under the MXU matmul.  Accumulation stays f32.
    acc_ref[...] += jnp.dot(x_ref[...].astype(jnp.bfloat16), wb_ref[...],
                            preferred_element_type=jnp.float32)

    @pl.when(k == pl.num_programs(1) - 1)
    def _():
        # backbone bias + GELU (f32 on VPU, tanh on EUP)
        feat = _gelu_tanh(acc_ref[...] + bb_ref[...])

        # Fused aux-loss partials: one |x| pass feeds both reductions; padded
        # batch rows are masked.  Only a sublane (row) reduce happens here —
        # the cross-lane reduce finishes in the wrapper.
        rows = i * tm + jax.lax.broadcasted_iota(jnp.int32, feat.shape, 0)
        a = jnp.abs(jnp.where(rows < b_orig, feat, 0.0))
        mlm_ref[...] = jnp.sum(a * a, axis=0, keepdims=True).reshape(1, 1, -1)
        crsc_ref[...] = jnp.sum(a, axis=0, keepdims=True).reshape(1, 1, -1)

        # head: small matmul on resident bf16 weights, lane-dense f32 output.
        logits = jnp.dot(feat.astype(jnp.bfloat16), wh_ref[...],
                         preferred_element_type=jnp.float32)
        logits_ref[...] = logits + bh_ref[...]


# ---------------------------------------------------------------------------
# wrapper
# ---------------------------------------------------------------------------
def multicrop_forward(x_nchw, params):
    """x_nchw: [B, C, H, W] float32 (PyTorch NCHW convention)."""
    B = x_nchw.shape[0]
    K = math.prod(x_nchw.shape[1:])
    assert K == params["K"], "input size does not match prepared backbone weight"
    D, NC = params["D"], params["NC"]
    Kp, NCp = params["Kp"], params["NCp"]

    vmem_budget = _vmem_budget_bytes()
    tm = _pick_tm(B, _mxu_row_cap(), _num_tensorcores())
    Bp = pl.cdiv(B, tm) * tm
    nbi = Bp // tm

    # K tile: largest multiple of 128 that divides Kp and fits the VMEM budget
    # alongside the double-buffered x (f32) / wb (bf16) streams.
    fixed = (2 * D * NCp * 2            # wh (resident, double-buffered alloc)
             + 2 * (D + NCp) * 4        # biases
             + 2 * tm * NCp * 4         # logits tile
             + 2 * 2 * D * 4            # loss-partial tiles
             + tm * D * 4)              # f32 accumulator scratch
    per_tk = 2 * tm * 4 + 2 * D * 2     # x tiles (f32) + wb tiles (bf16), 2 bufs each
    tk_max = max(LANE, (vmem_budget - fixed) // per_tk)
    tk = LANE
    for cand in range(LANE, min(tk_max, Kp) + 1, LANE):
        if Kp % cand == 0:
            tk = cand
    nk = Kp // tk
    assert fixed + per_tk * tk <= vmem_budget, "tile selection exceeded the VMEM budget"

    # layout plumbing on x: reshape only; pad (f32, zeros) only if actually needed.
    x_flat = x_nchw.reshape(B, K).astype(jnp.float32)
    if Bp != B or Kp != K:
        x_in = jnp.zeros((Bp, Kp), jnp.float32).at[:B, :K].set(x_flat)
    else:
        x_in = x_flat

    cost = pl.CostEstimate(
        flops=int(2 * Bp * Kp * D + 2 * Bp * D * NCp),
        transcendentals=int(Bp * D),
        bytes_accessed=int(Bp * Kp * 4              # x streamed once (f32)
                           + nbi * Kp * D * 2       # wb re-streamed per batch tile
                           + D * NCp * 2            # wh (once)
                           + (D + NCp) * 4          # biases
                           + Bp * NCp * 4           # logits
                           + 2 * nbi * D * 4),      # loss partials
    )

    kernel = functools.partial(multicrop_kernel, tm=tm, b_orig=B)

    logits_p, mlm_part, crsc_part = pl.pallas_call(
        kernel,
        out_shape=(
            jax.ShapeDtypeStruct((Bp, NCp), jnp.float32),
            jax.ShapeDtypeStruct((nbi, 1, D), jnp.float32),
            jax.ShapeDtypeStruct((nbi, 1, D), jnp.float32),
        ),
        grid_spec=pltpu.PrefetchScalarGridSpec(
            num_scalar_prefetch=0,
            grid=(nbi, nk),
            in_specs=[
                pl.BlockSpec((tm, tk), lambda i, k: (i, k)),    # x tile (f32)
                pl.BlockSpec((tk, D), lambda i, k: (k, 0)),     # wb tile (bf16)
                pl.BlockSpec((1, D), lambda i, k: (0, 0)),      # bb (resident)
                pl.BlockSpec((D, NCp), lambda i, k: (0, 0)),    # wh (resident)
                pl.BlockSpec((1, NCp), lambda i, k: (0, 0)),    # bh (resident)
            ],
            out_specs=(
                pl.BlockSpec((tm, NCp), lambda i, k: (i, 0)),        # logits
                pl.BlockSpec((1, 1, D), lambda i, k: (i, 0, 0)),     # mlm partials
                pl.BlockSpec((1, 1, D), lambda i, k: (i, 0, 0)),     # crsc partials
            ),
            scratch_shapes=[pltpu.VMEM((tm, D), jnp.float32)],
        ),
        compiler_params=pltpu.CompilerParams(
            dimension_semantics=("parallel", "arbitrary"),
            vmem_limit_bytes=int(vmem_budget),
        ),
        cost_estimate=cost,
    )(x_in, params["wb"], params["bb"], params["wh"], params["bh"])

    logits = logits_p[:B, :NC]
    denom = float(B * D)
    mlm = jnp.sum(mlm_part) / denom
    crsc = jnp.sum(crsc_part) / denom
    return logits, mlm, crsc


def _reference(x_nchw, params):
    """Pure-JAX reference using the same prepared (bf16-operand) parameters."""
    B = x_nchw.shape[0]
    K, D, NC = params["K"], params["D"], params["NC"]
    x = x_nchw.reshape(B, -1).astype(jnp.bfloat16)
    feat = _gelu_tanh(
        jnp.dot(x, params["wb"][:K, :], preferred_element_type=jnp.float32)
        + params["bb"])
    mlm = jnp.mean(feat * feat)
    crsc = jnp.mean(jnp.abs(feat))
    logits = (jnp.dot(feat.astype(jnp.bfloat16), params["wh"][:, :NC],
                      preferred_element_type=jnp.float32)
              + params["bh"][:, :NC])
    return logits, mlm, crsc


if __name__ == "__main__":
    # Small shapes consistent with the module's NCHW input convention.
    B, C, H, W = 2, 4, 16, 16
    K = C * H * W           # 1024
    D = 32                  # backbone embedding dim
    NC = 8                  # head output classes

    key = jax.random.PRNGKey(0)
    k0, k1, k2, k3, k4 = jax.random.split(key, 5)

    x = jax.random.normal(k0, (B, C, H, W), dtype=jnp.float32)
    wb = jax.random.normal(k1, (K, D), dtype=jnp.float32) * (1.0 / math.sqrt(K))
    bb = jax.random.normal(k2, (D,), dtype=jnp.float32) * 0.01
    wh = jax.random.normal(k3, (D, NC), dtype=jnp.float32) * (1.0 / math.sqrt(D))
    bh = jax.random.normal(k4, (NC,), dtype=jnp.float32) * 0.01

    # Weights are prepared (cast / padded) once and reused across calls.
    params = prepare_params(wb, bb, wh, bh)

    logits, mlm_loss, crsc_loss = multicrop_forward(x, params)
    jax.block_until_ready((logits, mlm_loss, crsc_loss))

    # Correctness check against a pure-JAX reference sharing the same prepared
    # bf16-operand parameters (tolerances cover accumulation-order differences).
    ref_logits, ref_mlm, ref_crsc = _reference(x, params)
    assert logits.shape == (B, NC)
    assert jnp.allclose(logits, ref_logits, atol=1e-2, rtol=1e-2)
    assert jnp.allclose(mlm_loss, ref_mlm, atol=1e-2, rtol=1e-2)
    assert jnp.allclose(crsc_loss, ref_crsc, atol=1e-2, rtol=1e-2)

    print("KERNEL_OK")
</pallas_src>

<mosaic_0001>
module attributes {stable_mosaic.version = 11 : i64} {
  func.func @multicrop_kernel(%arg0: i32, %arg1: i32, %arg2: memref<2x1024xf32, #tpu.memory_space<vmem>>, %arg3: memref<1024x32xbf16, #tpu.memory_space<vmem>>, %arg4: memref<1x32xf32, #tpu.memory_space<vmem>>, %arg5: memref<32x128xbf16, #tpu.memory_space<vmem>>, %arg6: memref<1x128xf32, #tpu.memory_space<vmem>>, %arg7: memref<2x128xf32, #tpu.memory_space<vmem>>, %arg8: memref<1x1x32xf32, #tpu.memory_space<vmem>>, %arg9: memref<1x1x32xf32, #tpu.memory_space<vmem>>, %arg10: memref<2x32xf32, #tpu.memory_space<vmem>>) attributes {dimension_semantics = [#tpu.dimension_semantics<parallel>, #tpu.dimension_semantics<arbitrary>], iteration_bounds = array<i64: 1, 1>, scalar_prefetch = 0 : i64, scratch_operands = 1 : i64, tpu.core_type = #tpu.core_type<tc>, window_params = [{transform_indices = @transform_0, window_bounds = array<i64: 2, 1024>}, {transform_indices = @transform_1, window_bounds = array<i64: 1024, 32>}, {pipeline_mode = #tpu.pipeline_mode<synchronous>, transform_indices = @transform_2, window_bounds = array<i64: 1, 32>}, {pipeline_mode = #tpu.pipeline_mode<synchronous>, transform_indices = @transform_3, window_bounds = array<i64: 32, 128>}, {pipeline_mode = #tpu.pipeline_mode<synchronous>, transform_indices = @transform_4, window_bounds = array<i64: 1, 128>}, {transform_indices = @transform_5, window_bounds = array<i64: 2, 128>}, {transform_indices = @transform_6, window_bounds = array<i64: 1, 1, 32>}, {transform_indices = @transform_7, window_bounds = array<i64: 1, 1, 32>}]} {
    %c0_i32 = arith.constant 0 : i32
    %0 = arith.cmpi eq, %arg1, %c0_i32 : i32
    %1 = arith.extui %0 : i1 to i32
    %c0_i32_0 = arith.constant 0 : i32
    %2 = arith.cmpi ne, %1, %c0_i32_0 : i32
    scf.if %2 {
      %cst_10 = arith.constant 0.000000e+00 : f32
      %13 = vector.broadcast %cst_10 : f32 to vector<2x32xf32>
      %c0_11 = arith.constant 0 : index
      %c0_12 = arith.constant 0 : index
      %14 = vector.load %arg10[%c0_11, %c0_12] : memref<2x32xf32, #tpu.memory_space<vmem>>, vector<2x32xf32>
      tpu.vector_store %arg10[%c0_11, %c0_12], %13 {strides = array<i32>} : memref<2x32xf32, #tpu.memory_space<vmem>>, vector<2x32xf32>,
    } else {
    }
    %c0 = arith.constant 0 : index
    %c0_1 = arith.constant 0 : index
    %3 = vector.load %arg10[%c0, %c0_1] : memref<2x32xf32, #tpu.memory_space<vmem>>, vector<2x32xf32>
    %c0_2 = arith.constant 0 : index
    %c0_3 = arith.constant 0 : index
    %4 = vector.load %arg2[%c0_2, %c0_3] : memref<2x1024xf32, #tpu.memory_space<vmem>>, vector<2x1024xf32>
    %5 = arith.truncf %4 : vector<2x1024xf32> to vector<2x1024xbf16>
    %c0_4 = arith.constant 0 : index
    %c0_5 = arith.constant 0 : index
    %6 = vector.load %arg3[%c0_4, %c0_5] : memref<1024x32xbf16, #tpu.memory_space<vmem>>, vector<1024x32xbf16>
    %cst = arith.constant dense<0.000000e+00> : vector<2x32xf32>
    %7 = tpu.matmul %5, %6, %cst {dimension_numbers = #tpu.dot_dimension_numbers<[1], [0], [0], [1], [0, 0, 1, 1], [], []>} : vector<2x1024xbf16>, vector<1024x32xbf16>, vector<2x32xf32> -> vector<2x32xf32>
    %8 = arith.addf %3, %7 : vector<2x32xf32>
    %c0_6 = arith.constant 0 : index
    %c0_7 = arith.constant 0 : index
    %9 = vector.load %arg10[%c0_6, %c0_7] : memref<2x32xf32, #tpu.memory_space<vmem>>, vector<2x32xf32>
    tpu.vector_store %arg10[%c0_6, %c0_7], %8 {strides = array<i32>} : memref<2x32xf32, #tpu.memory_space<vmem>>, vector<2x32xf32>,
    %c0_i32_8 = arith.constant 0 : i32
    %10 = arith.cmpi eq, %arg1, %c0_i32_8 : i32
    %11 = arith.extui %10 : i1 to i32
    %c0_i32_9 = arith.constant 0 : i32
    %12 = arith.cmpi ne, %11, %c0_i32_9 : i32
    scf.if %12 {
      %c0_10 = arith.constant 0 : index
      %c0_11 = arith.constant 0 : index
      %13 = vector.load %arg10[%c0_10, %c0_11] : memref<2x32xf32, #tpu.memory_space<vmem>>, vector<2x32xf32>
      %c0_12 = arith.constant 0 : index
      %c0_13 = arith.constant 0 : index
      %14 = vector.load %arg4[%c0_12, %c0_13] : memref<1x32xf32, #tpu.memory_space<vmem>>, vector<1x32xf32>
      %15 = vector.broadcast %14 : vector<1x32xf32> to vector<2x32xf32>
      %16 = arith.addf %13, %15 : vector<2x32xf32>
      %cst_14 = arith.constant 5.000000e-01 : f32
      %17 = vector.broadcast %cst_14 : f32 to vector<2x32xf32>
      %18 = arith.mulf %17, %16 : vector<2x32xf32>
      %cst_15 = arith.constant 4.471500e-02 : f32
      %19 = vector.broadcast %cst_15 : f32 to vector<2x32xf32>
      %20 = arith.mulf %19, %16 : vector<2x32xf32>
      %21 = arith.mulf %20, %16 : vector<2x32xf32>
      %22 = arith.mulf %21, %16 : vector<2x32xf32>
      %23 = arith.addf %16, %22 : vector<2x32xf32>
      %cst_16 = arith.constant 0.797884583 : f32
      %24 = vector.broadcast %cst_16 : f32 to vector<2x32xf32>
      %25 = arith.mulf %24, %23 : vector<2x32xf32>
      %26 = math.tanh %25 : vector<2x32xf32>
      %cst_17 = arith.constant 1.000000e+00 : f32
      %27 = vector.broadcast %cst_17 : f32 to vector<2x32xf32>
      %28 = arith.addf %27, %26 : vector<2x32xf32>
      %29 = arith.mulf %18, %28 : vector<2x32xf32>
      %c2_i32 = arith.constant 2 : i32
      %30 = arith.muli %arg0, %c2_i32 : i32
      %31 = tpu.iota {dimensions = array<i32: 0>} : vector<2x32xi32>
      %32 = vector.broadcast %30 : i32 to vector<2x32xi32>
      %33 = arith.addi %32, %31 : vector<2x32xi32>
      %c2_i32_18 = arith.constant 2 : i32
      %34 = vector.broadcast %c2_i32_18 : i32 to vector<2x32xi32>
      %35 = arith.cmpi slt, %33, %34 : vector<2x32xi32>
      %cst_19 = arith.constant 0.000000e+00 : f32
      %36 = vector.broadcast %cst_19 : f32 to vector<2x32xf32>
      %37 = arith.select %35, %29, %36 : vector<2x32xi1>, vector<2x32xf32>
      %38 = math.absf %37 : vector<2x32xf32>
      %39 = arith.mulf %38, %38 : vector<2x32xf32>
      %cst_20 = arith.constant dense<0.000000e+00> : vector<32xf32>
      %40 = vector.multi_reduction <add>, %39, %cst_20 [0] : vector<2x32xf32> to vector<32xf32>
      %41 = vector.shape_cast %40 : vector<32xf32> to vector<1x32xf32>
      %42 = vector.shape_cast %41 : vector<1x32xf32> to vector<1x1x32xf32>
      %c0_21 = arith.constant 0 : index
      %c0_22 = arith.constant 0 : index
      %c0_23 = arith.constant 0 : index
      %43 = vector.load %arg8[%c0_21, %c0_22, %c0_23] : memref<1x1x32xf32, #tpu.memory_space<vmem>>, vector<1x1x32xf32>
      tpu.vector_store %arg8[%c0_21, %c0_22, %c0_23], %42 {strides = array<i32>} : memref<1x1x32xf32, #tpu.memory_space<vmem>>, vector<1x1x32xf32>,
      %cst_24 = arith.constant dense<0.000000e+00> : vector<32xf32>
      %44 = vector.multi_reduction <add>, %38, %cst_24 [0] : vector<2x32xf32> to vector<32xf32>
      %45 = vector.shape_cast %44 : vector<32xf32> to vector<1x32xf32>
      %46 = vector.shape_cast %45 : vector<1x32xf32> to vector<1x1x32xf32>
      %c0_25 = arith.constant 0 : index
      %c0_26 = arith.constant 0 : index
      %c0_27 = arith.constant 0 : index
      %47 = vector.load %arg9[%c0_25, %c0_26, %c0_27] : memref<1x1x32xf32, #tpu.memory_space<vmem>>, vector<1x1x32xf32>
      tpu.vector_store %arg9[%c0_25, %c0_26, %c0_27], %46 {strides = array<i32>} : memref<1x1x32xf32, #tpu.memory_space<vmem>>, vector<1x1x32xf32>,
      %48 = arith.truncf %29 : vector<2x32xf32> to vector<2x32xbf16>
      %c0_28 = arith.constant 0 : index
      %c0_29 = arith.constant 0 : index
      %49 = vector.load %arg5[%c0_28, %c0_29] : memref<32x128xbf16, #tpu.memory_space<vmem>>, vector<32x128xbf16>
      %cst_30 = arith.constant dense<0.000000e+00> : vector<2x128xf32>
      %50 = tpu.matmul %48, %49, %cst_30 {dimension_numbers = #tpu.dot_dimension_numbers<[1], [0], [0], [1], [0, 0, 1, 1], [], []>} : vector<2x32xbf16>, vector<32x128xbf16>, vector<2x128xf32> -> vector<2x128xf32>
      %c0_31 = arith.constant 0 : index
      %c0_32 = arith.constant 0 : index
      %51 = vector.load %arg6[%c0_31, %c0_32] : memref<1x128xf32, #tpu.memory_space<vmem>>, vector<1x128xf32>
      %52 = vector.broadcast %51 : vector<1x128xf32> to vector<2x128xf32>
      %53 = arith.addf %50, %52 : vector<2x128xf32>
      %c0_33 = arith.constant 0 : index
      %c0_34 = arith.constant 0 : index
      %54 = vector.load %arg7[%c0_33, %c0_34] : memref<2x128xf32, #tpu.memory_space<vmem>>, vector<2x128xf32>
      tpu.vector_store %arg7[%c0_33, %c0_34], %53 {strides = array<i32>} : memref<2x128xf32, #tpu.memory_space<vmem>>, vector<2x128xf32>,
    } else {
    }
    return
  }
  func.func @transform_0(%arg0: i32, %arg1: i32) -> (i32, i32) {
    %c0_i32 = arith.constant 0 : i32
    return %arg0, %arg1 : i32, i32
  }
  func.func @transform_1(%arg0: i32, %arg1: i32) -> (i32, i32) {
    %c0_i32 = arith.constant 0 : i32
    %c0_i32_0 = arith.constant 0 : i32
    return %arg1, %c0_i32 : i32, i32
  }
  func.func @transform_2(%arg0: i32, %arg1: i32) -> (i32, i32) {
    %c0_i32 = arith.constant 0 : i32
    %c0_i32_0 = arith.constant 0 : i32
    %c0_i32_1 = arith.constant 0 : i32
    return %c0_i32, %c0_i32_0 : i32, i32
  }
  func.func @transform_3(%arg0: i32, %arg1: i32) -> (i32, i32) {
    %c0_i32 = arith.constant 0 : i32
    %c0_i32_0 = arith.constant 0 : i32
    %c0_i32_1 = arith.constant 0 : i32
    return %c0_i32, %c0_i32_0 : i32, i32
  }
  func.func @transform_4(%arg0: i32, %arg1: i32) -> (i32, i32) {
    %c0_i32 = arith.constant 0 : i32
    %c0_i32_0 = arith.constant 0 : i32
    %c0_i32_1 = arith.constant 0 : i32
    return %c0_i32, %c0_i32_0 : i32, i32
  }
  func.func @transform_5(%arg0: i32, %arg1: i32) -> (i32, i32) {
    %c0_i32 = arith.constant 0 : i32
    %c0_i32_0 = arith.constant 0 : i32
    return %arg0, %c0_i32 : i32, i32
  }
  func.func @transform_6(%arg0: i32, %arg1: i32) -> (i32, i32, i32) {
    %c0_i32 = arith.constant 0 : i32
    %c0_i32_0 = arith.constant 0 : i32
    %c0_i32_1 = arith.constant 0 : i32
    return %arg0, %c0_i32, %c0_i32_0 : i32, i32, i32
  }
  func.func @transform_7(%arg0: i32, %arg1: i32) -> (i32, i32, i32) {
    %c0_i32 = arith.constant 0 : i32
    %c0_i32_0 = arith.constant 0 : i32
    %c0_i32_1 = arith.constant 0 : i32
    return %arg0, %c0_i32, %c0_i32_0 : i32, i32, i32
  }
}

</mosaic_0001>

<bundles_post_ra>
// kernel: tpu_custom_call.1
= control target key start
LH: loop header
LB: loop body
LE: loop exit
PB: predicated region body
PF: predicated region fallthrough
CT: control target
= control target key end

     0   :  { %13 = vsyncpa [#allocation4], 0  ;;  %v41_v28 = vlaneseq  ;;  %v1227_v36 = vmov 1983009808   ;;  %s1506_s0 = inlined_call_operand.vmem [shape: f32[2,1024], index: 0, kind: input, shape index: {}]   ;;  %s1507_s1 = inlined_call_operand.vmem [shape: bf16[1024,32], index: 1, kind: input, shape index: {}]   ;;  %s1508_s2 = inlined_call_operand.vmem [shape: f32[1,32], index: 2, kind: input, shape index: {}]   ;;  %s1509_s3 = inlined_call_operand.vmem [shape: bf16[32,128], index: 3, kind: input, shape index: {}]   ;;  %s1510_s4 = inlined_call_operand.vmem [shape: f32[1,128], index: 4, kind: input, shape index: {}]   ;;  %s1511_s5 = inlined_call_operand.hbm [shape: f32[2,128], index: 5, kind: output, shape index: {0}]   ;;  %s1512_s6 = inlined_call_operand.hbm [shape: f32[1,1,32], index: 6, kind: output, shape index: {1}]   ;;  %s1513_s7 = inlined_call_operand.hbm [shape: f32[1,1,32], index: 7, kind: output, shape index: {2}]  }
   0x1   :  { %v1093_v0 = vld [vmem:[%s1507_s1 + $0x78] sm:$0xff]   ;;  %v1097_v4 = vld [vmem:[%s1507_s1 + $0x70] sm:$0xff]   ;;  %v1101_v8 = vld [vmem:[%s1507_s1 + $0x68] sm:$0xff]   ;;  %v39_v37 = vunpack.c.l.s4 %v1227_v36 }
   0x2   :  { %v1094_v1 = vld [vmem:[%s1507_s1 + $0xf8] sm:$0xff]   ;;  %988 = vmatprep.subr.bf16.mxu0 %v1093_v0  ;;  %v1098_v5 = vld [vmem:[%s1507_s1 + $0xf0] sm:$0xff]   ;;  %v1102_v9 = vld [vmem:[%s1507_s1 + $0xe8] sm:$0xff]   ;;  %v1369_v33 = vshrl.u32 %v41_v28, 7 }
   0x3   :  { %v1095_v2 = vld [vmem:[%s1507_s1 + $0x38] sm:$0xff]   ;;  %1010 = vmatprep.subr.bf16.mxu1 %v1094_v1  ;;  %v1099_v6 = vld [vmem:[%s1507_s1 + $0x30] sm:$0xff]   ;;  %v1103_v10 = vld [vmem:[%s1507_s1 + $0x28] sm:$0xff]   ;;  %v40_v39 = vunpack.c.0.s8 %v39_v37 }
   0x4   :  { %v1096_v3 = vld [vmem:[%s1507_s1 + $0xb8] sm:$0xff]   ;;  %989 = vmatpush3.bf16.msra.mxu0 %v1095_v2  ;;  %v1100_v7 = vld [vmem:[%s1507_s1 + $0xb0] sm:$0xff]   ;;  %v1104_v11 = vld [vmem:[%s1507_s1 + $0xa8] sm:$0xff]  }
   0x5   :  { %1011 = vmatpush3.bf16.msra.mxu1 %v1096_v3  ;;  %990 = vmatprep.subr.bf16.mxu0 %v1097_v4  ;;  %v1105_v12 = vld [vmem:[%s1507_s1 + $0x60] sm:$0xff]   ;;  %v1109_v16 = vld [vmem:[%s1507_s1 + $0x58] sm:$0xff]   ;;  %v1113_v20 = vld [vmem:[%s1507_s1 + $0x50] sm:$0xff]   ;;  %v1381_v41 = vsub.s32 %v40_v39, %v1369_v33 }
   0x6   :  { %1012 = vmatprep.subr.bf16.mxu1 %v1098_v5  ;;  %v1106_v13 = vld [vmem:[%s1507_s1 + $0xe0] sm:$0xff]   ;;  %v1110_v17 = vld [vmem:[%s1507_s1 + $0xd8] sm:$0xff]   ;;  %v1114_v21 = vld [vmem:[%s1507_s1 + $0xd0] sm:$0xff]  }
   0x7   :  { %v1107_v14 = vld [vmem:[%s1507_s1 + $0x20] sm:$0xff]   ;;  %v1111_v18 = vld [vmem:[%s1507_s1 + $0x18] sm:$0xff]   ;;  %v1115_v22 = vld [vmem:[%s1507_s1 + $0x10] sm:$0xff]  }
   0x8   :  { %991 = vmatpush3.bf16.msra.mxu0 %v1099_v6  ;;  %v1108_v15 = vld [vmem:[%s1507_s1 + $0xa0] sm:$0xff]   ;;  %v1112_v19 = vld [vmem:[%s1507_s1 + $0x98] sm:$0xff]   ;;  %v1116_v23 = vld [vmem:[%s1507_s1 + $0x90] sm:$0xff]  }
   0x9   :  { %1013 = vmatpush3.bf16.msra.mxu1 %v1100_v7  ;;  %992 = vmatprep.subr.bf16.mxu0 %v1101_v8  ;;  %v1117_v24 = vld [vmem:[%s1507_s1 + $0x48] sm:$0xff]   ;;  %v1121_v29 = vld [vmem:[%s1507_s1 + $0x40] sm:$0xff]   ;;  %v1126_v35 = vld [vmem:[%s1507_s1 + $0x178] sm:$0xff]  }
   0xa   :  { %1014 = vmatprep.subr.bf16.mxu1 %v1102_v9  ;;  %v1118_v25 = vld [vmem:[%s1507_s1 + $0xc8] sm:$0xff]   ;;  %v1122_v30 = vld [vmem:[%s1507_s1 + $0xc0] sm:$0xff]   ;;  %v1127_v38 = vld [vmem:[%s1507_s1 + $0x1f8] sm:$0xff]  }
   0xb   :  { %v1119_v26 = vld [vmem:[%s1507_s1 + $0x8] sm:$0xff]   ;;  %v1123_v31 = vld [vmem:[%s1507_s1] sm:$0xff]   ;;  %v1128_v46 = vld [vmem:[%s1507_s1 + $0x138] sm:$0xff]  }
   0xc   :  { %993 = vmatpush3.bf16.msra.mxu0 %v1103_v10  ;;  %v1120_v27 = vld [vmem:[%s1507_s1 + $0x88] sm:$0xff]   ;;  %v1124_v32 = vld [vmem:[%s1507_s1 + $0x80] sm:$0xff]   ;;  %v1129_v49 = vld [vmem:[%s1507_s1 + $0x1b8] sm:$0xff]  }
   0xd   :  { %1015 = vmatpush3.bf16.msra.mxu1 %v1104_v11  ;;  %994 = vmatprep.subr.bf16.mxu0 %v1105_v12  ;;  %v33_v34 = vld [vmem:[%s1506_s0] sm:$0xff]  ;;  %v1130_v52 = vld [vmem:[%s1507_s1 + $0x170] sm:$0xff]   ;;  %v1134_v56 = vld [vmem:[%s1507_s1 + $0x168] sm:$0xff]  }
   0xe   :  { %1016 = vmatprep.subr.bf16.mxu1 %v1106_v13  ;;  %v37_v40 = vcombine.high %v33_v34, %v33_v34  ;;  %v44_v42 = vrot.slane %v33_v34, %v1381_v41  ;;  %v1131_v53 = vld [vmem:[%s1507_s1 + $0x1f0] sm:$0xff]   ;;  %v1135_v57 = vld [vmem:[%s1507_s1 + $0x1e8] sm:$0xff]   ;;  %v1138_v60 = vld [vmem:[%s1507_s1 + $0x160] sm:$0xff]  }
   0xf   :  { %v1132_v54 = vld [vmem:[%s1507_s1 + $0x130] sm:$0xff]   ;;  %v1136_v58 = vld [vmem:[%s1507_s1 + $0x128] sm:$0xff]   ;;  %v1139_v61 = vld [vmem:[%s1507_s1 + $0x1e0] sm:$0xff]  }
  0x10   :  { %995 = vmatpush3.bf16.msra.mxu0 %v1107_v14  ;;  %v51_v43 = vrot.slane %v37_v40, %v1381_v41  ;;  %v52_v44 = vcombine.high %v44_v42, %v44_v42  ;;  %v79_v47 = vpack.c.bf16 %v44_v42, %v44_v42  ;;  %v1133_v55 = vld [vmem:[%s1507_s1 + $0x1b0] sm:$0xff]   ;;  %v1137_v59 = vld [vmem:[%s1507_s1 + $0x1a8] sm:$0xff]   ;;  %v1140_v62 = vld [vmem:[%s1507_s1 + $0x120] sm:$0xff]  }
  0x11   :  { %1017 = vmatpush3.bf16.msra.mxu1 %v1108_v15  ;;  %996 = vmatprep.subr.bf16.mxu0 %v1109_v16  ;;  %v1141_v63 = vld [vmem:[%s1507_s1 + $0x1a0] sm:$0xff]   ;;  %v1142_v0 = vld [vmem:[%s1507_s1 + $0x158] sm:$0xff]   ;;  %v1146_v4 = vld [vmem:[%s1507_s1 + $0x150] sm:$0xff]  }
  0x12   :  { %1018 = vmatprep.subr.bf16.mxu1 %v1110_v17  ;;  %v53_v45 = vcombine.high %v51_v43, %v51_v43  ;;  %v81_v48 = vpack.c.bf16 %v51_v43, %v51_v43  ;;  %v80_v50 = vpack.c.bf16 %v52_v44, %v52_v44  ;;  %v1143_v1 = vld [vmem:[%s1507_s1 + $0x1d8] sm:$0xff]   ;;  %v1147_v5 = vld [vmem:[%s1507_s1 + $0x1d0] sm:$0xff]   ;;  %v1150_v8 = vld [vmem:[%s1507_s1 + $0x148] sm:$0xff]  }
  0x13   :  { %v1144_v2 = vld [vmem:[%s1507_s1 + $0x118] sm:$0xff]   ;;  %v1148_v6 = vld [vmem:[%s1507_s1 + $0x110] sm:$0xff]   ;;  %v1151_v9 = vld [vmem:[%s1507_s1 + $0x1c8] sm:$0xff]  }
  0x14   :  { %997 = vmatpush3.bf16.msra.mxu0 %v1111_v18  ;;  %v82_v51 = vpack.c.bf16 %v53_v45, %v53_v45  ;;  %631 = vmatprep.mubr.bf16.mxu0 %v80_v50  ;;  %v1145_v3 = vld [vmem:[%s1507_s1 + $0x198] sm:$0xff]   ;;  %v1149_v7 = vld [vmem:[%s1507_s1 + $0x190] sm:$0xff]   ;;  %v34_v10 = vld [vmem:[%s1506_s0 + $0x8] sm:$0xff] }
  0x15   :  { %1019 = vmatpush3.bf16.msra.mxu1 %v1112_v19  ;;  %998 = vmatprep.subr.bf16.mxu0 %v1113_v20  ;;  %v61_v11 = vrot.slane %v34_v10, %v1381_v41  ;;  %v54_v12 = vcombine.high %v34_v10, %v34_v10 }
  0x16   :  { %1020 = vmatprep.subr.bf16.mxu1 %v1114_v21  ;;  %671 = vmatprep.mubr.bf16.mxu1 %v82_v51 }
  0x18   :  { %999 = vmatpush3.bf16.msra.mxu0 %v1115_v22 }
  0x19   :  { %1021 = vmatpush3.bf16.msra.mxu1 %v1116_v23  ;;  %1000 = vmatprep.subr.bf16.mxu0 %v1117_v24 }
  0x1a   :  { %1022 = vmatprep.subr.bf16.mxu1 %v1118_v25 }
  0x1c   :  { %1001 = vmatpush3.bf16.msra.mxu0 %v1119_v26 }
  0x1d   :  { %1023 = vmatpush3.bf16.msra.mxu1 %v1120_v27  ;;  %1002 = vmatprep.subr.bf16.mxu0 %v1121_v29 }
  0x1e   :  { %1024 = vmatprep.subr.bf16.mxu1 %v1122_v30 }
  0x20   :  { %1003 = vmatpush3.bf16.msra.mxu0 %v1123_v31 }
  0x21   :  { %1025 = vmatpush3.bf16.msra.mxu1 %v1124_v32  ;;  %1032 = vmatprep.subr.bf16.mxu0 %v1126_v35 }
  0x22   :  { %1054 = vmatprep.subr.bf16.mxu1 %v1127_v38 }
  0x23   :  { %632 = vmatmul.mubr.bf16.vlgmr.msra.gmra.mxu0 %v79_v47 }
  0x24   :  { %672 = vmatmul.mubr.bf16.vlgmr.msra.gmra.mxu1 %v81_v48  ;;  %1033 = vmatpush3.bf16.msra.mxu0 %v1128_v46 }
  0x25   :  { %1055 = vmatpush3.bf16.msra.mxu1 %v1129_v49  ;;  %1034 = vmatprep.subr.bf16.mxu0 %v1130_v52 }
  0x26   :  { %1056 = vmatprep.subr.bf16.mxu1 %v1131_v53 }
  0x28   :  { %1035 = vmatpush3.bf16.msra.mxu0 %v1132_v54 }
  0x29   :  { %1057 = vmatpush3.bf16.msra.mxu1 %v1133_v55  ;;  %1036 = vmatprep.subr.bf16.mxu0 %v1134_v56 }
  0x2a   :  { %1058 = vmatprep.subr.bf16.mxu1 %v1135_v57 }
  0x2c   :  { %1037 = vmatpush3.bf16.msra.mxu0 %v1136_v58 }
  0x2d   :  { %1059 = vmatpush3.bf16.msra.mxu1 %v1137_v59  ;;  %1038 = vmatprep.subr.bf16.mxu0 %v1138_v60 }
  0x2e   :  { %1060 = vmatprep.subr.bf16.mxu1 %v1139_v61 }
  0x30   :  { %1039 = vmatpush3.bf16.msra.mxu0 %v1140_v62 }
  0x31   :  { %1061 = vmatpush3.bf16.msra.mxu1 %v1141_v63  ;;  %1040 = vmatprep.subr.bf16.mxu0 %v1142_v0 }
  0x32   :  { %1062 = vmatprep.subr.bf16.mxu1 %v1143_v1 }
  0x34   :  { %1041 = vmatpush3.bf16.msra.mxu0 %v1144_v2 }
  0x35   :  { %1063 = vmatpush3.bf16.msra.mxu1 %v1145_v3  ;;  %1042 = vmatprep.subr.bf16.mxu0 %v1146_v4 }
  0x36   :  { %1064 = vmatprep.subr.bf16.mxu1 %v1147_v5 }
  0x37   :  { %14 = vsyncpa [#allocation6], 0  ;;  %v1152_v13 = vld [vmem:[%s1507_s1 + $0x108] sm:$0xff]   ;;  %v69_v15 = vcombine.high %v61_v11, %v61_v11  ;;  %v68_v16 = vrot.slane %v54_v12, %v1381_v41  ;;  %v1154_v17 = vld [vmem:[%s1507_s1 + $0x140] sm:$0xff]   ;;  %v83_v24 = vpack.c.bf16 %v61_v11, %v61_v11  ;;  %vm30_vm0 = vcmask 254976  }
  0x38   :  { %1043 = vmatpush3.bf16.msra.mxu0 %v1148_v6  ;;  %v1153_v14 = vld [vmem:[%s1507_s1 + $0x188] sm:$0xff]   ;;  %v1155_v18 = vld [vmem:[%s1507_s1 + $0x1c0] sm:$0xff]   ;;  %v1228_v26 = vmov 0.0   ;;  %vm1229_vm1 = vmmov 0   ;;  %vm788_vm2 = vcmp.lt.s32.totalorder %v1369_v33, 2  ;;  %vm833_vm3 = vcmask 261120  }
  0x39   :  { %1065 = vmatpush3.bf16.msra.mxu1 %v1149_v7  ;;  %1044 = vmatprep.subr.bf16.mxu0 %v1150_v8  ;;  %v84_v19 = vpack.c.bf16 %v69_v15, %v69_v15  ;;  %v70_v20 = vcombine.high %v68_v16, %v68_v16  ;;  %v1156_v21 = vld [vmem:[%s1507_s1 + $0x100] sm:$0xff]   ;;  %v85_v25 = vpack.c.bf16 %v68_v16, %v68_v16  ;;  %v1159_v27 = vld [vmem:[%s1509_s3 + $0x8] sm:$0xff]   ;;  %vm799_vm4 = vcmask 253952  }
  0x3a   :  { %1066 = vmatprep.subr.bf16.mxu1 %v1151_v9  ;;  %v1157_v22 = vld [vmem:[%s1507_s1 + $0x180] sm:$0xff]   ;;  %31 = vst.msk [vmem:[#allocation2] sm:$0x3] %vm30_vm0, %v1228_v26 }
  0x3b   :  { %v86_v23 = vpack.c.bf16 %v70_v20, %v70_v20  ;;  %711 = vmatprep.mubr.bf16.mxu0 %v84_v19  ;;  %v1160_v28 = vld [vmem:[%s1509_s3] sm:$0xff]  }
  0x3c   :  { %1045 = vmatpush3.bf16.msra.mxu0 %v1152_v13  ;;  %v983_v55 = vld [vmem:[%s1508_s2] ss:$0 sm:$0xff]  ;;  %s1230_s2 = smov [#allocation5]  }
  0x3d   :  { %1067 = vmatpush3.bf16.msra.mxu1 %v1153_v14  ;;  %1046 = vmatprep.subr.bf16.mxu0 %v1154_v17  ;;  %s894_s21 = sshll.u32 %s1230_s2, 4  ;;  %s895_s21 = int_to_ptr.vmem [resolvable:$true] %s894_s21 }
  0x3e   :  { %1068 = vmatprep.subr.bf16.mxu1 %v1155_v18  ;;  %751 = vmatprep.mubr.bf16.mxu1 %v86_v23  ;;  %s1163_s22 = scalar_lea.vmem %s895_s21, 16  ;;  %s1167_s23 = scalar_lea.vmem %s895_s21, 32 }
  0x3f   :  { %p1164_p0 = scmp.ne.s32.totalorder %s895_s21, %s1163_s22  ;;  %p1168_p1 = scmp.lt.s32.totalorder %s895_s21, %s895_s21 }
  0x40   :  { %1047 = vmatpush3.bf16.msra.mxu0 %v1156_v21  ;;  %p1169_p2 = scmp.lt.s32.totalorder %s1167_s23, %s1163_s22 }
  0x41   :  { %1069 = vmatpush3.bf16.msra.mxu1 %v1157_v22  ;;  %1079 = vmatprep.subr.bf16.mxu0 %v1228_v26  ;;  %v32_v52 = vld [vmem:[#allocation2] sm:$0x3] }
  0x42   :  { %p1170_p3 = por %p1169_p2, %p1168_p1 }
  0x43   :  { %712 = vmatmul.mubr.bf16.vlgmr.msra.gmra.mxu0 %v83_v24 }
  0x44   :  { %752 = vmatmul.mubr.bf16.vlgmr.msra.gmra.mxu1 %v85_v25  ;;  %1083 = vmatprep.mubr.msk.bf16.mxu0 %vm1229_vm1, %v1228_v26  ;;  %p1171_p4 = pnand %p1170_p3, %p1164_p0 }
  0x45   :  { %1080 = vmatpush3.bf16.msra.mxu0 %v1159_v27 }
  0x46   :  { %1081 = vmatprep.subr.bf16.mxu0 %v1228_v26 }
  0x49   :  { %1082 = vmatpush3.bf16.msra.mxu0 %v1160_v28 }
  0xe3   :  { %v1004_v29 = vpop.f32.mrf.mxu0 }
  0xe4   :  { %v1026_v30 = vpop.f32.mrf.mxu1 }
  0xe5   :  { %v1005_v31 = vpop.f32.mrf.mxu0 }
  0xe6   :  { %v1027_v32 = vpop.f32.mrf.mxu1  ;;  %v1006_v38 = vadd.f32 %v1005_v31, %v1004_v29 }
  0xe7   :  { %v1007_v34 = vpop.f32.mrf.mxu0  ;;  %v1028_v39 = vadd.f32 %v1027_v32, %v1026_v30 }
  0xe8   :  { %v1029_v35 = vpop.f32.mrf.mxu1 }
  0xe9   :  { %v1008_v36 = vpop.f32.mrf.mxu0  ;;  %v674_v44 = vadd.f32 %v1028_v39, %v1006_v38 }
  0xea   :  { %v1030_v37 = vpop.f32.mrf.mxu1 }
 0x103   :  { %v1048_v40 = vpop.f32.mrf.mxu0 }
 0x104   :  { %v1070_v41 = vpop.f32.mrf.mxu1 }
 0x105   :  { %v1049_v42 = vpop.f32.mrf.mxu0 }
 0x106   :  { %v1071_v43 = vpop.f32.mrf.mxu1  ;;  %v1050_v45 = vadd.f32 %v1049_v42, %v1048_v40 }
 0x107   :  { %v1051_v46 = vpop.f32.mrf.mxu0  ;;  %v1072_v49 = vadd.f32 %v1071_v43, %v1070_v41 }
 0x108   :  { %v1073_v47 = vpop.f32.mrf.mxu1  ;;  %v714_v48 = vadd.f32 %v1050_v45, %v674_v44 }
 0x109   :  { %v1052_v50 = vpop.f32.mrf.mxu0 }
 0x10a   :  { %v1074_v51 = vpop.f32.mrf.mxu1  ;;  %v754_v53 = vadd.f32 %v1072_v49, %v714_v48 }
 0x10c   :  { %v759_v54 = vadd.f32 %v754_v53, %v32_v52 }
 0x10e   :  { %761 = vst.msk [vmem:[#allocation2] sm:$0x3] %vm30_vm0, %v759_v54 }
 0x115   :  { %v765_v56 = vld [vmem:[#allocation2] sm:$0x3] }
 0x116   :  { %v773_v57 = vadd.f32 %v983_v55, %v765_v56 }
 0x118   :  { %v775_v58 = vmul.f32 0.044715, %v773_v57  ;;  %v774_v0 = vmul.f32 0.5, %v773_v57 }
 0x11a   :  { %v776_v59 = vmul.f32 %v775_v58, %v773_v57 }
 0x11c   :  { %v777_v60 = vmul.f32 %v776_v59, %v773_v57 }
 0x11e   :  { %v778_v61 = vadd.f32 %v777_v60, %v773_v57 }
 0x120   :  { %v779_v62 = vmul.f32 0.7978846, %v778_v61 }
 0x122   :  { %1161 = vtanh.f32 %v779_v62 }
 0x12f   :  { %v1162_v63 = vpop.eup %1161 }
 0x130   :  { %v781_v1 = vadd.f32 1.0, %v1162_v63 }
 0x132   :  { %v782_v2 = vmul.f32 %v781_v1, %v774_v0 }
 0x134   :  { %v809_v3 = vpack.c.bf16 %v782_v2, %v782_v2  ;;  %v789_v4 = vsel %vm788_vm2, %v782_v2, 0.0 }
 0x135   :  { %v790_v5 = vand.u32 2147483647, %v789_v4 }
 0x136   :  { %1084 = vmatmul.mubr.msk.bf16.vlgmr.msra.gmra.mxu0 %vm833_vm3, %v809_v3 }
 0x137   :  { %v791_v6 = vmul.f32 %v790_v5, %v790_v5  ;;  %v801_v7 = vsel %vm30_vm0, %v790_v5, 0.0 }
 0x138   :  { %v802_v8 = vrot.slane %v801_v7, 4 }
 0x139   :  { %v792_v9 = vsel %vm30_vm0, %v791_v6, 0.0 }
 0x13a   :  { %v793_v10 = vrot.slane %v792_v9, 4  ;;  %v803_v11 = vadd.f32 %v802_v8, %v801_v7 }
 0x13c   :  { %v794_v12 = vadd.f32 %v793_v10, %v792_v9  ;;  %v804_v13 = vrot.slane %v803_v11, 2 }
 0x13e   :  { %v795_v14 = vrot.slane %v794_v12, 2  ;;  %v805_v15 = vadd.f32 %v804_v13, %v803_v11 }
 0x140   :  { %v796_v16 = vadd.f32 %v795_v14, %v794_v12  ;;  %v806_v33 = vrot.slane %v805_v15, 1 }
 0x142   :  { %v797_v17 = vrot.slane %v796_v16, 1  ;;  %v807_v18 = vadd.f32 %v806_v33, %v805_v15 }
 0x144   :  { %v798_v19 = vadd.f32 %v797_v17, %v796_v16  ;;  %808 = vst.msk [vmem:[#allocation7] sm:$0x1] %vm799_vm4, %v807_v18 }
 0x146   :  { %800 = vst.msk [vmem:[#allocation5] sm:$0x1] %vm799_vm4, %v798_v19 }
 0x147   :  { %1174 = shalt.err (!%p1171_p4)
}
 0x148   :  { %897 = dma.vmem_to_hbm [thread:$0]  %s895_s21, 16, %s1512_s6, [#allocation6]  }
 0x149   :  { %s1231_s26 = smov [#allocation7]  }
 0x14a   :  { %s904_s27 = sshll.u32 %s1231_s26, 4  ;;  %s905_s27 = int_to_ptr.vmem [resolvable:$true] %s904_s27 }
 0x14b   :  { %s1183_s28 = scalar_lea.vmem %s905_s27, 16  ;;  %s1187_s29 = scalar_lea.vmem %s905_s27, 32 }
 0x14c   :  { %p1184_p5 = scmp.ne.s32.totalorder %s905_s27, %s1183_s28  ;;  %p1188_p6 = scmp.lt.s32.totalorder %s905_s27, %s905_s27 }
 0x14d   :  { %p1189_p7 = scmp.lt.s32.totalorder %s1187_s29, %s1183_s28 }
 0x14f   :  { %p1190_p8 = por %p1189_p7, %p1188_p6 }
 0x151   :  { %p1191_p9 = pnand %p1190_p8, %p1184_p5 }
 0x153   :  { %1194 = shalt.err (!%p1191_p9)
}
 0x154   :  { %907 = dma.vmem_to_hbm [thread:$0]  %s905_s27, 16, %s1513_s7, [#allocation6]   ;;  %v984_v20 = vld [vmem:[%s1510_s4] ss:$0 sm:$0xff] }
 0x155   :  { %s1232_s6 = smov [#allocation3]  }
 0x156   :  { %s884_s10 = sshll.u32 %s1232_s6, 4  ;;  %s885_s10 = int_to_ptr.vmem [resolvable:$true] %s884_s10 }
 0x157   :  { %s1203_s11 = scalar_lea.vmem %s885_s10, 32  ;;  %p1208_p11 = scmp.lt.s32.totalorder %s885_s10, %s885_s10 }
 0x158   :  { %p1204_p10 = scmp.ne.s32.totalorder %s885_s10, %s1203_s11  ;;  %p1209_p12 = scmp.lt.s32.totalorder %s1203_s11, %s1203_s11 }
 0x15a   :  { %p1210_p13 = por %p1209_p12, %p1208_p11 }
 0x15c   :  { %p1211_p0 = pnand %p1210_p13, %p1204_p10 }
 0x1f6   :  { %v871_v21 = vpop.f32.mrf.mxu0 }
 0x1f7   :  { %v872_v22 = vadd.f32 %v984_v20, %v871_v21 }
 0x1f8   :  { %v1085_v23 = vpop.f32.mrf.mxu0 }
 0x1f9   :  { %877 = vst [vmem:[#allocation3] sm:$0x3] %v872_v22 }
 0x1fa   :  { %v874_v24 = vpop.f32.mrf.mxu0 }
 0x1fb   :  { %1214 = shalt.err (!%p1211_p0)
}
 0x1fc   :  { %887 = dma.vmem_to_hbm [thread:$0]  %s885_s10, 32, %s1511_s5, [#allocation4]   ;;  %v1086_v25 = vpop.f32.mrf.mxu0 }
 0x1fd   :  { %1223 = dma.done.wait [#allocation4], 32  }
 0x1fe   :  { %1224 = vsyncadd [#allocation4], 4294967264 }
 0x1ff   :  { %1225 = dma.done.wait [#allocation6], 32  }
 0x200   :  { %1226 = vsyncadd [#allocation6], 4294967264 }
 0x201   :  { %917 = vsyncpa [#allocation4], 1 }
 0x202   :  { %918 = vsyncpa [#allocation6], 1 }

</bundles_post_ra>
